<compile_context>
chip_gen: v7x
topology: tpu7x:2x2x1
jax: 0.10.0
libtpu: 0.0.40
codegen_flags: <defaults>
</compile_context>

<pallas_src>
import jax
import jax.numpy as jnp
from jax import lax
from jax.experimental import pallas as pl
from jax.experimental.pallas import tpu as pltpu


# ---------------------------------------------------------------------------
# Fused Pallas kernel: all GAT layers + node gather + classifier
# ---------------------------------------------------------------------------

def _fused_model_kernel(x_ref, w_aug_ref, bias_ref, adj_ref, node_ref,
                        cls_w_ref, cls_b_ref, o_ref):
    """Whole forward pass in VMEM.

    x_ref     : [N, D]            node_graph_feat (f32)
    w_aug_ref : [L, D, Dp+128]    augmented weights (bf16):
                                  cols [0:D)      -> W
                                  col  Dp         -> W @ att_dst^T
                                  col  Dp+1       -> W @ att_src^T   (Dp = ceil(D/128)*128)
    bias_ref  : [L, 1, D]         per-layer output bias (f32)
    adj_ref   : [N, N]  int8      adj[i, j] = 1 iff edge j->i (self loops included)
    node_ref  : [B, 1]  int32     queried node ids
    cls_w_ref : [D, C]            classifier weight (f32)
    cls_b_ref : [1, C]            classifier bias (f32)
    o_ref     : [B, C]            logits
    """
    n, d = x_ref.shape
    d_pad = ((d + 127) // 128) * 128          # lane-aligned start of the attention columns
    num_layers = w_aug_ref.shape[0]

    emb = x_ref[...]                                              # [N, D] f32

    # Additive attention mask built once, in-kernel, from the 0/1 int8 adjacency.
    # (adj - 1) * 1e30 -> 0 where edge, -1e30 where no edge (no compare/select needed).
    mask_bias = (adj_ref[...].astype(jnp.float32) - 1.0) * 1e30   # [N, N]

    # Unrolled layer loop (L is small and static).
    for l in range(num_layers):
        w_aug = w_aug_ref[l]                                      # [D, Dp+128] bf16

        # Single MXU matmul yields h, e_dst and e_src together.
        h_aug = jnp.dot(emb.astype(jnp.bfloat16), w_aug,
                        preferred_element_type=jnp.float32)       # [N, Dp+128] f32
        h = h_aug[:, :d]                                          # [N, D]
        e_dst = h_aug[:, d_pad:d_pad + 1]                         # [N, 1]

        # e_src as a row: one XLU transpose of the lane-aligned 128-wide tail tile.
        tail_t = jnp.transpose(h_aug[:, d_pad:d_pad + 128])       # [128, N]
        e_src_row = tail_t[1:2, :]                                # [1, N]

        # score[i, j] = leaky_relu(e_dst[i] + e_src[j], 0.2)
        scores = e_dst + e_src_row                                # [N, N]
        scores = jnp.maximum(scores, 0.2 * scores)                # leaky_relu(., 0.2)
        masked = scores + mask_bias                               # [N, N]

        # Softmax over source nodes j (f32).
        m = jnp.max(masked, axis=-1, keepdims=True)               # [N, 1]
        p = jnp.exp(masked - m)                                   # [N, N]
        denom = jnp.sum(p, axis=-1, keepdims=True)                # [N, 1]
        inv = pl.reciprocal(denom, approx=True)                   # EUP reciprocal

        h_bf = h.astype(jnp.bfloat16)
        bias = bias_ref[l]                                        # [1, D]
        if n > d:
            # Normalize AFTER aggregation: VPU multiply on [N, D] instead of [N, N].
            agg = jnp.dot(p.astype(jnp.bfloat16), h_bf,
                          preferred_element_type=jnp.float32)     # [N, D]
            emb = agg * inv + bias
        else:
            alpha = (p * inv).astype(jnp.bfloat16)                # [N, N]
            emb = jnp.dot(alpha, h_bf,
                          preferred_element_type=jnp.float32) + bias

    # Gather queried nodes with an in-kernel one-hot (iota == idx) MXU matmul.
    idx = node_ref[...]                                           # [B, 1] int32
    b = idx.shape[0]
    cols = lax.broadcasted_iota(jnp.int32, (b, n), 1)             # [B, N]
    onehot = (cols == idx).astype(jnp.float32)                    # [B, N]
    cls_feat = jnp.dot(onehot, emb,
                       preferred_element_type=jnp.float32)        # [B, D]
    logits = jnp.dot(cls_feat, cls_w_ref[...],
                     preferred_element_type=jnp.float32) + cls_b_ref[...]  # [B, C]
    o_ref[...] = logits.astype(o_ref.dtype)


# ---------------------------------------------------------------------------
# Wrapper
# ---------------------------------------------------------------------------

_VMEM_SPEC = pl.BlockSpec(memory_space=pltpu.MemorySpace.VMEM)


def model_forward(params, adj_i8, node_idx):
    """Full fused forward: GAT layers -> gather -> classifier, one pallas_call."""
    x = params["node_graph_feat"]                                 # [N, D]
    batch = node_idx.shape[0]
    n_class = params["cls_w"].shape[-1]

    node_col = node_idx.astype(jnp.int32).reshape(batch, 1)       # [B, 1]

    return pl.pallas_call(
        _fused_model_kernel,
        out_shape=jax.ShapeDtypeStruct((batch, n_class), jnp.float32),
        in_specs=[_VMEM_SPEC] * 7,
        out_specs=_VMEM_SPEC,
    )(
        x,
        params["w_aug_stack"],
        params["bias_stack"],
        adj_i8,
        node_col,
        params["cls_w"],
        params["cls_b"],
    )


# ---------------------------------------------------------------------------
# Parameter / input construction (deterministic, in-script)
# ---------------------------------------------------------------------------

def build_params(key, n_nodes, dim, gnn_layers, n_class):
    keys = jax.random.split(key, 4 * gnn_layers + 3)
    k = iter(keys)

    w_list, asrc_list, adst_list, b_list = [], [], [], []
    for _ in range(gnn_layers):
        w_list.append(0.1 * jax.random.normal(next(k), (dim, dim), jnp.float32))
        asrc_list.append(0.1 * jax.random.normal(next(k), (1, dim), jnp.float32))
        adst_list.append(0.1 * jax.random.normal(next(k), (1, dim), jnp.float32))
        b_list.append(0.1 * jax.random.normal(next(k), (1, dim), jnp.float32))

    return dict(
        node_graph_feat=jax.random.normal(next(k), (n_nodes, dim), jnp.float32),
        w_stack=jnp.stack(w_list, axis=0),            # [L, D, D]
        att_src_stack=jnp.stack(asrc_list, axis=0),   # [L, 1, D]
        att_dst_stack=jnp.stack(adst_list, axis=0),   # [L, 1, D]
        bias_stack=jnp.stack(b_list, axis=0),         # [L, 1, D]
        cls_w=0.1 * jax.random.normal(next(k), (dim, n_class), jnp.float32),
        cls_b=0.1 * jax.random.normal(next(k), (1, n_class), jnp.float32),
    )


def prepare_params(raw):
    """One-time (outside the hot path) folding of the attention projections into
    an augmented, lane-padded, bf16 weight stack."""
    w = raw["w_stack"]                                            # [L, D, D]
    a_src = raw["att_src_stack"]                                  # [L, 1, D]
    a_dst = raw["att_dst_stack"]                                  # [L, 1, D]
    num_layers, dim, _ = w.shape
    d_pad = ((dim + 127) // 128) * 128

    w_main = jnp.pad(w, ((0, 0), (0, 0), (0, d_pad - dim)))       # [L, D, Dp]
    w_dst = jnp.einsum("lij,lkj->lik", w, a_dst)                  # [L, D, 1]  W @ att_dst^T
    w_src = jnp.einsum("lij,lkj->lik", w, a_src)                  # [L, D, 1]  W @ att_src^T
    tail_pad = jnp.zeros((num_layers, dim, 126), w.dtype)         # pad tail tile to 128 lanes
    w_aug = jnp.concatenate([w_main, w_dst, w_src, tail_pad], axis=2)  # [L, D, Dp+128]

    return dict(
        node_graph_feat=raw["node_graph_feat"],
        w_aug_stack=w_aug.astype(jnp.bfloat16),
        bias_stack=raw["bias_stack"],
        cls_w=raw["cls_w"],
        cls_b=raw["cls_b"],
    )


def build_adjacency(key, n_nodes, n_edges):
    """Dense int8 [N_dst, N_src] mask from a random edge list, with self-loops added
    (matching PyG GATConv's add_self_loops=True default)."""
    k_src, k_dst = jax.random.split(key)
    src = jax.random.randint(k_src, (n_edges,), 0, n_nodes)
    dst = jax.random.randint(k_dst, (n_edges,), 0, n_nodes)
    neighbors = jnp.stack([src, dst], axis=0)                     # [2, E] like args.neighbors
    adj = jnp.zeros((n_nodes, n_nodes), jnp.int8)
    adj = adj.at[neighbors[1], neighbors[0]].set(1)               # edge j -> i  => adj[i, j]
    adj = adj.at[jnp.arange(n_nodes), jnp.arange(n_nodes)].set(1)  # self loops
    return adj, neighbors


# ---------------------------------------------------------------------------

if __name__ == "__main__":
    N_NODES = 64       # number of graph nodes
    DIM = 128          # node_graph_feat.shape[-1]
    GNN_LAYERS = 2
    N_CLASS = 8
    N_EDGES = 256
    BATCH = 16         # number of queried nodes in `node`

    root = jax.random.PRNGKey(0)
    k_params, k_adj, k_node = jax.random.split(root, 3)

    raw_params = build_params(k_params, N_NODES, DIM, GNN_LAYERS, N_CLASS)
    params = prepare_params(raw_params)
    adj_i8, _neighbors = build_adjacency(k_adj, N_NODES, N_EDGES)
    node = jax.random.randint(k_node, (BATCH,), 0, N_NODES)

    fwd = jax.jit(model_forward)
    pred = fwd(params, adj_i8, node)
    pred = jax.block_until_ready(pred)

    assert pred.shape == (BATCH, N_CLASS), pred.shape
    assert jnp.all(jnp.isfinite(pred))
    print("KERNEL_OK")
</pallas_src>

<mosaic_0001>
module attributes {stable_mosaic.version = 11 : i64} {
  func.func @_fused_model_kernel(%arg0: memref<64x128xf32, #tpu.memory_space<vmem>>, %arg1: memref<2x128x256xbf16, #tpu.memory_space<vmem>>, %arg2: memref<2x1x128xf32, #tpu.memory_space<vmem>>, %arg3: memref<64x64xi8, #tpu.memory_space<vmem>>, %arg4: memref<16x1xi32, #tpu.memory_space<vmem>>, %arg5: memref<128x8xf32, #tpu.memory_space<vmem>>, %arg6: memref<1x8xf32, #tpu.memory_space<vmem>>, %arg7: memref<16x8xf32, #tpu.memory_space<vmem>>) attributes {dimension_semantics = [], scalar_prefetch = 0 : i64, scratch_operands = 0 : i64, tpu.core_type = #tpu.core_type<tc>} {
    %c0 = arith.constant 0 : index
    %c0_0 = arith.constant 0 : index
    %0 = vector.load %arg0[%c0, %c0_0] : memref<64x128xf32, #tpu.memory_space<vmem>>, vector<64x128xf32>
    %c0_1 = arith.constant 0 : index
    %c0_2 = arith.constant 0 : index
    %1 = vector.load %arg3[%c0_1, %c0_2] : memref<64x64xi8, #tpu.memory_space<vmem>>, vector<64x64xi8>
    %2 = arith.sitofp %1 : vector<64x64xi8> to vector<64x64xf32>
    %cst = arith.constant 1.000000e+00 : f32
    %3 = vector.broadcast %cst : f32 to vector<64x64xf32>
    %4 = arith.subf %2, %3 : vector<64x64xf32>
    %cst_3 = arith.constant 1.000000e+30 : f32
    %5 = vector.broadcast %cst_3 : f32 to vector<64x64xf32>
    %6 = arith.mulf %4, %5 : vector<64x64xf32>
    %c0_4 = arith.constant 0 : index
    %c0_5 = arith.constant 0 : index
    %c0_6 = arith.constant 0 : index
    %7 = vector.load %arg1[%c0_4, %c0_5, %c0_6] : memref<2x128x256xbf16, #tpu.memory_space<vmem>>, vector<1x128x256xbf16>
    %8 = vector.shape_cast %7 : vector<1x128x256xbf16> to vector<128x256xbf16>
    %9 = arith.truncf %0 : vector<64x128xf32> to vector<64x128xbf16>
    %cst_7 = arith.constant dense<0.000000e+00> : vector<64x256xf32>
    %10 = tpu.matmul %9, %8, %cst_7 {dimension_numbers = #tpu.dot_dimension_numbers<[1], [0], [0], [1], [0, 0, 1, 1], [], []>} : vector<64x128xbf16>, vector<128x256xbf16>, vector<64x256xf32> -> vector<64x256xf32>
    %11 = vector.extract_strided_slice %10 {offsets = [0, 0], sizes = [64, 128], strides = [1, 1]} : vector<64x256xf32> to vector<64x128xf32>
    %12 = vector.extract_strided_slice %10 {offsets = [0, 128], sizes = [64, 1], strides = [1, 1]} : vector<64x256xf32> to vector<64x1xf32>
    %13 = vector.extract_strided_slice %10 {offsets = [0, 128], sizes = [64, 128], strides = [1, 1]} : vector<64x256xf32> to vector<64x128xf32>
    %14 = tpu.transpose %13, [1, 0] : vector<64x128xf32> -> vector<128x64xf32>
    %15 = vector.extract_strided_slice %14 {offsets = [1, 0], sizes = [1, 64], strides = [1, 1]} : vector<128x64xf32> to vector<1x64xf32>
    %16 = vector.broadcast %12 : vector<64x1xf32> to vector<64x64xf32>
    %17 = vector.broadcast %15 : vector<1x64xf32> to vector<64x64xf32>
    %18 = arith.addf %16, %17 : vector<64x64xf32>
    %cst_8 = arith.constant 2.000000e-01 : f32
    %19 = vector.broadcast %cst_8 : f32 to vector<64x64xf32>
    %20 = arith.mulf %19, %18 : vector<64x64xf32>
    %21 = arith.maximumf %18, %20 : vector<64x64xf32>
    %22 = arith.addf %21, %6 : vector<64x64xf32>
    %cst_9 = arith.constant dense<0xFF800000> : vector<64xf32>
    %23 = vector.multi_reduction <maximumf>, %22, %cst_9 [1] : vector<64x64xf32> to vector<64xf32>
    %24 = vector.shape_cast %23 : vector<64xf32> to vector<64x1xf32>
    %25 = vector.broadcast %24 : vector<64x1xf32> to vector<64x64xf32>
    %26 = arith.subf %22, %25 : vector<64x64xf32>
    %27 = math.exp %26 : vector<64x64xf32>
    %cst_10 = arith.constant dense<0.000000e+00> : vector<64xf32>
    %28 = vector.multi_reduction <add>, %27, %cst_10 [1] : vector<64x64xf32> to vector<64xf32>
    %29 = vector.shape_cast %28 : vector<64xf32> to vector<64x1xf32>
    %30 = tpu.reciprocal %29 {approx = true} : vector<64x1xf32> -> vector<64x1xf32>
    %31 = arith.truncf %11 : vector<64x128xf32> to vector<64x128xbf16>
    %c0_11 = arith.constant 0 : index
    %c0_12 = arith.constant 0 : index
    %c0_13 = arith.constant 0 : index
    %32 = vector.load %arg2[%c0_11, %c0_12, %c0_13] : memref<2x1x128xf32, #tpu.memory_space<vmem>>, vector<1x1x128xf32>
    %33 = vector.shape_cast %32 : vector<1x1x128xf32> to vector<1x128xf32>
    %34 = vector.broadcast %30 : vector<64x1xf32> to vector<64x64xf32>
    %35 = arith.mulf %27, %34 : vector<64x64xf32>
    %36 = arith.truncf %35 : vector<64x64xf32> to vector<64x64xbf16>
    %cst_14 = arith.constant dense<0.000000e+00> : vector<64x128xf32>
    %37 = tpu.matmul %36, %31, %cst_14 {dimension_numbers = #tpu.dot_dimension_numbers<[1], [0], [0], [1], [0, 0, 1, 1], [], []>} : vector<64x64xbf16>, vector<64x128xbf16>, vector<64x128xf32> -> vector<64x128xf32>
    %38 = vector.broadcast %33 : vector<1x128xf32> to vector<64x128xf32>
    %39 = arith.addf %37, %38 : vector<64x128xf32>
    %c1 = arith.constant 1 : index
    %c0_15 = arith.constant 0 : index
    %c0_16 = arith.constant 0 : index
    %40 = vector.load %arg1[%c1, %c0_15, %c0_16] : memref<2x128x256xbf16, #tpu.memory_space<vmem>>, vector<1x128x256xbf16>
    %41 = vector.shape_cast %40 : vector<1x128x256xbf16> to vector<128x256xbf16>
    %42 = arith.truncf %39 : vector<64x128xf32> to vector<64x128xbf16>
    %cst_17 = arith.constant dense<0.000000e+00> : vector<64x256xf32>
    %43 = tpu.matmul %42, %41, %cst_17 {dimension_numbers = #tpu.dot_dimension_numbers<[1], [0], [0], [1], [0, 0, 1, 1], [], []>} : vector<64x128xbf16>, vector<128x256xbf16>, vector<64x256xf32> -> vector<64x256xf32>
    %44 = vector.extract_strided_slice %43 {offsets = [0, 0], sizes = [64, 128], strides = [1, 1]} : vector<64x256xf32> to vector<64x128xf32>
    %45 = vector.extract_strided_slice %43 {offsets = [0, 128], sizes = [64, 1], strides = [1, 1]} : vector<64x256xf32> to vector<64x1xf32>
    %46 = vector.extract_strided_slice %43 {offsets = [0, 128], sizes = [64, 128], strides = [1, 1]} : vector<64x256xf32> to vector<64x128xf32>
    %47 = tpu.transpose %46, [1, 0] : vector<64x128xf32> -> vector<128x64xf32>
    %48 = vector.extract_strided_slice %47 {offsets = [1, 0], sizes = [1, 64], strides = [1, 1]} : vector<128x64xf32> to vector<1x64xf32>
    %49 = vector.broadcast %45 : vector<64x1xf32> to vector<64x64xf32>
    %50 = vector.broadcast %48 : vector<1x64xf32> to vector<64x64xf32>
    %51 = arith.addf %49, %50 : vector<64x64xf32>
    %cst_18 = arith.constant 2.000000e-01 : f32
    %52 = vector.broadcast %cst_18 : f32 to vector<64x64xf32>
    %53 = arith.mulf %52, %51 : vector<64x64xf32>
    %54 = arith.maximumf %51, %53 : vector<64x64xf32>
    %55 = arith.addf %54, %6 : vector<64x64xf32>
    %cst_19 = arith.constant dense<0xFF800000> : vector<64xf32>
    %56 = vector.multi_reduction <maximumf>, %55, %cst_19 [1] : vector<64x64xf32> to vector<64xf32>
    %57 = vector.shape_cast %56 : vector<64xf32> to vector<64x1xf32>
    %58 = vector.broadcast %57 : vector<64x1xf32> to vector<64x64xf32>
    %59 = arith.subf %55, %58 : vector<64x64xf32>
    %60 = math.exp %59 : vector<64x64xf32>
    %cst_20 = arith.constant dense<0.000000e+00> : vector<64xf32>
    %61 = vector.multi_reduction <add>, %60, %cst_20 [1] : vector<64x64xf32> to vector<64xf32>
    %62 = vector.shape_cast %61 : vector<64xf32> to vector<64x1xf32>
    %63 = tpu.reciprocal %62 {approx = true} : vector<64x1xf32> -> vector<64x1xf32>
    %64 = arith.truncf %44 : vector<64x128xf32> to vector<64x128xbf16>
    %c1_21 = arith.constant 1 : index
    %c0_22 = arith.constant 0 : index
    %c0_23 = arith.constant 0 : index
    %65 = vector.load %arg2[%c1_21, %c0_22, %c0_23] : memref<2x1x128xf32, #tpu.memory_space<vmem>>, vector<1x1x128xf32>
    %66 = vector.shape_cast %65 : vector<1x1x128xf32> to vector<1x128xf32>
    %67 = vector.broadcast %63 : vector<64x1xf32> to vector<64x64xf32>
    %68 = arith.mulf %60, %67 : vector<64x64xf32>
    %69 = arith.truncf %68 : vector<64x64xf32> to vector<64x64xbf16>
    %cst_24 = arith.constant dense<0.000000e+00> : vector<64x128xf32>
    %70 = tpu.matmul %69, %64, %cst_24 {dimension_numbers = #tpu.dot_dimension_numbers<[1], [0], [0], [1], [0, 0, 1, 1], [], []>} : vector<64x64xbf16>, vector<64x128xbf16>, vector<64x128xf32> -> vector<64x128xf32>
    %71 = vector.broadcast %66 : vector<1x128xf32> to vector<64x128xf32>
    %72 = arith.addf %70, %71 : vector<64x128xf32>
    %c0_25 = arith.constant 0 : index
    %c0_26 = arith.constant 0 : index
    %73 = vector.load %arg4[%c0_25, %c0_26] : memref<16x1xi32, #tpu.memory_space<vmem>>, vector<16x1xi32>
    %74 = tpu.iota {dimensions = array<i32: 1>} : vector<16x64xi32>
    %75 = vector.broadcast %73 : vector<16x1xi32> to vector<16x64xi32>
    %76 = arith.cmpi eq, %74, %75 : vector<16x64xi32>
    %77 = arith.extui %76 : vector<16x64xi1> to vector<16x64xi32>
    %78 = arith.sitofp %77 : vector<16x64xi32> to vector<16x64xf32>
    %cst_27 = arith.constant dense<0.000000e+00> : vector<16x128xf32>
    %79 = tpu.matmul %78, %72, %cst_27 {dimension_numbers = #tpu.dot_dimension_numbers<[1], [0], [0], [1], [0, 0, 1, 1], [], []>} : vector<16x64xf32>, vector<64x128xf32>, vector<16x128xf32> -> vector<16x128xf32>
    %c0_28 = arith.constant 0 : index
    %c0_29 = arith.constant 0 : index
    %80 = vector.load %arg5[%c0_28, %c0_29] : memref<128x8xf32, #tpu.memory_space<vmem>>, vector<128x8xf32>
    %cst_30 = arith.constant dense<0.000000e+00> : vector<16x8xf32>
    %81 = tpu.matmul %79, %80, %cst_30 {dimension_numbers = #tpu.dot_dimension_numbers<[1], [0], [0], [1], [0, 0, 1, 1], [], []>} : vector<16x128xf32>, vector<128x8xf32>, vector<16x8xf32> -> vector<16x8xf32>
    %c0_31 = arith.constant 0 : index
    %c0_32 = arith.constant 0 : index
    %82 = vector.load %arg6[%c0_31, %c0_32] : memref<1x8xf32, #tpu.memory_space<vmem>>, vector<1x8xf32>
    %83 = vector.broadcast %82 : vector<1x8xf32> to vector<16x8xf32>
    %84 = arith.addf %81, %83 : vector<16x8xf32>
    %c0_33 = arith.constant 0 : index
    %c0_34 = arith.constant 0 : index
    %85 = vector.load %arg7[%c0_33, %c0_34] : memref<16x8xf32, #tpu.memory_space<vmem>>, vector<16x8xf32>
    tpu.vector_store %arg7[%c0_33, %c0_34], %84 {strides = array<i32>} : memref<16x8xf32, #tpu.memory_space<vmem>>, vector<16x8xf32>,
    return
  }
}

</mosaic_0001>

<bundles_post_ra>
// kernel: model_forward.1
= control target key start
LH: loop header
LB: loop body
LE: loop exit
PB: predicated region body
PF: predicated region fallthrough
CT: control target
= control target key end

     0   :  { %12 = vsyncpa [#allocation3], 0  ;;  %s1588_s24 = smov [#allocation2]   ;;  %s1857_s0 = inlined_call_operand.vmem [shape: f32[64,128], index: 0, kind: input, shape index: {}]   ;;  %s1858_s1 = inlined_call_operand.hbm [shape: bf16[2,128,256], index: 1, kind: input, shape index: {}]   ;;  %s1859_s2 = inlined_call_operand.vmem [shape: f32[2,1,128], index: 2, kind: input, shape index: {}]   ;;  %s1860_s3 = inlined_call_operand.vmem [shape: s8[64,64], index: 3, kind: input, shape index: {}]   ;;  %s1861_s4 = inlined_call_operand.vmem [shape: s32[16,1], index: 4, kind: input, shape index: {}]   ;;  %s1862_s5 = inlined_call_operand.vmem [shape: f32[128,8], index: 5, kind: input, shape index: {}]   ;;  %s1863_s6 = inlined_call_operand.vmem [shape: f32[1,8], index: 6, kind: input, shape index: {}]   ;;  %s1864_s7 = inlined_call_operand.vmem [shape: f32[16,8], index: 7, kind: output, shape index: {}]  }
   0x1   :  { %s20_s25 = sshll.u32 %s1588_s24, 4  ;;  %s1564_s28 = scalar_lea.hbm %s1858_s1, 4096  ;;  %s21_s25 = int_to_ptr.vmem [resolvable:$true] %s20_s25 }
   0x2   :  { %p1565_p0 = scmp.ne.s32.totalorder %s1858_s1, %s1564_s28  ;;  %p1568_p1 = scmp.lt.u32.totalorder %s1564_s28, %s1858_s1 }
   0x4   :  { %p1570_p2 = pnand %p1568_p1, %p1565_p0 }
   0x6   :  { %1573 = shalt.err (!%p1570_p2)
}
   0x7   :  { %s1574_s10 = scalar_lea.vmem %s21_s25, 4096  ;;  %p1579_p4 = scmp.lt.s32.totalorder %s21_s25, %s21_s25 }
   0x8   :  { %p1575_p3 = scmp.ne.s32.totalorder %s21_s25, %s1574_s10  ;;  %p1580_p5 = scmp.lt.s32.totalorder %s1574_s10, %s1574_s10 }
   0xa   :  { %p1581_p6 = por %p1580_p5, %p1579_p4 }
   0xc   :  { %p1582_p7 = pnand %p1581_p6, %p1575_p3 }
   0xe   :  { %1585 = shalt.err (!%p1582_p7)
}
   0xf   :  { %s1589_s11 = smov 128   ;;  %s1590_s12 = smov 8  }
  0x10   :  { %26 = dma.hbm_to_vmem [thread:$0]  %s1858_s1, 4096, %s21_s25, [#allocation3], %s1589_s11, %s1589_s11, %s1590_s12  }
  0x11   :  { %1586 = dma.done.wait [#allocation3], 4096  }
  0x12   :  { %1587 = vsyncadd [#allocation3], 4294963200  ;;  %v1591_v0 = vmov 0   ;;  %v1452_v1 = vld [vmem:[#allocation2 + $0x4] ss:$8 sps:$4 sm:$0xff]   ;;  %v43_v20 = vld [vmem:[%s1857_s0 + $0x10] sm:$0xff]  ;;  %v328_v52 = vlaneseq }
  0x13   :  { %215 = vmatprep.mubr.bf16.mxu0 %v1591_v0  ;;  %1450 = vset.pattern.permute.xlu0 %v1591_v0  ;;  %v1454_v2 = vld [vmem:[#allocation2] ss:$8 sps:$4 sm:$0xff]   ;;  %v1455_v3 = vld [vmem:[#allocation2 + $0x14] ss:$8 sps:$4 sm:$0xff]   ;;  %v1457_v4 = vld [vmem:[#allocation2 + $0x10] ss:$8 sps:$4 sm:$0xff]  }
  0x14   :  { %1451 = vset.pattern.permute.xlu1 %v1591_v0  ;;  %183 = vmatprep.subr.bf16.mxu0 %v1452_v1  ;;  %v1458_v5 = vld [vmem:[#allocation2 + $0x24] ss:$8 sps:$4 sm:$0xff]   ;;  %v1460_v6 = vld [vmem:[#allocation2 + $0x20] ss:$8 sps:$4 sm:$0xff]   ;;  %v1461_v7 = vld [vmem:[#allocation2 + $0x34] ss:$8 sps:$4 sm:$0xff]  }
  0x15   :  { %184 = vmatpush1.bf16.msra.mxu0 %v1454_v2  ;;  %v1463_v8 = vld [vmem:[#allocation2 + $0x30] ss:$8 sps:$4 sm:$0xff]   ;;  %v1464_v9 = vld [vmem:[#allocation2 + $0x44] ss:$8 sps:$4 sm:$0xff]   ;;  %v1466_v10 = vld [vmem:[#allocation2 + $0x40] ss:$8 sps:$4 sm:$0xff]  }
  0x16   :  { %185 = vmatprep.subr.bf16.mxu0 %v1455_v3  ;;  %v1467_v11 = vld [vmem:[#allocation2 + $0x54] ss:$8 sps:$4 sm:$0xff]   ;;  %v1469_v12 = vld [vmem:[#allocation2 + $0x50] ss:$8 sps:$4 sm:$0xff]   ;;  %v1470_v13 = vld [vmem:[#allocation2 + $0x64] ss:$8 sps:$4 sm:$0xff]  }
  0x17   :  { %v1472_v14 = vld [vmem:[#allocation2 + $0x60] ss:$8 sps:$4 sm:$0xff]   ;;  %v1473_v15 = vld [vmem:[#allocation2 + $0x74] ss:$8 sps:$4 sm:$0xff]   ;;  %v1475_v16 = vld [vmem:[#allocation2 + $0x70] ss:$8 sps:$4 sm:$0xff]  }
  0x18   :  { %v41_v17 = vld [vmem:[%s1857_s0] sm:$0xff]  ;;  %v42_v18 = vld [vmem:[%s1857_s0 + $0x8] sm:$0xff]  ;;  %v44_v21 = vld [vmem:[%s1857_s0 + $0x18] sm:$0xff]  ;;  %v1685_v58 = vshrl.u32 %v328_v52, 7  ;;  %vm364_vm0 = vcmask 523264   ;;  %vm1203_vm3 = vcmask 64512  }
  0x19   :  { %186 = vmatpush1.bf16.msra.mxu0 %v1457_v4  ;;  %v99_v19 = vpack.c.bf16 %v42_v18, %v41_v17  ;;  %v100_v22 = vpack.c.bf16 %v44_v21, %v43_v20  ;;  %v45_v23 = vld [vmem:[%s1857_s0 + $0x20] sm:$0xff]  ;;  %v46_v24 = vld [vmem:[%s1857_s0 + $0x28] sm:$0xff]  ;;  %v47_v26 = vld [vmem:[%s1857_s0 + $0x30] sm:$0xff] }
  0x1a   :  { %187 = vmatprep.subr.bf16.mxu0 %v1458_v5  ;;  %v101_v25 = vpack.c.bf16 %v46_v24, %v45_v23  ;;  %v48_v27 = vld [vmem:[%s1857_s0 + $0x38] sm:$0xff]  ;;  %v49_v53 = vld [vmem:[%s1860_s3] sm:$0xff]  ;;  %v1681_v54 = vld [vmem:[%s1860_s3 + $0x8] sm:$0xff]  ;;  %v330_v1 = vsub.s32 1, %v1685_v58 }
  0x1b   :  { %v102_v28 = vpack.c.bf16 %v48_v27, %v47_v26  ;;  %v51_v56 = vunpack.c.0.s8 %v49_v53  ;;  %v58_v57 = vunpack.c.3.s8 %v1681_v54  ;;  %v52_v60 = vunpack.c.1.s8 %v49_v53 }
  0x1c   :  { %v53_v4 = vunpack.c.2.s8 %v49_v53 }
  0x1d   :  { %188 = vmatpush1.bf16.msra.mxu0 %v1460_v6  ;;  %v59_v62 = vcvt.s32.f32 %v51_v56  ;;  %v66_v63 = vcvt.s32.f32 %v58_v57  ;;  %v60_v3 = vcvt.s32.f32 %v52_v60 }
  0x1e   :  { %189 = vmatprep.subr.bf16.mxu0 %v1461_v7 }
  0x1f   :  { %v1211_v6 = vadd.f32 -1.0, %v59_v62  ;;  %v1218_v7 = vadd.f32 -1.0, %v66_v63 }
  0x21   :  { %190 = vmatpush1.bf16.msra.mxu0 %v1463_v8  ;;  %v1690_v17 = vmul.f32 1e+30, %v1211_v6  ;;  %v1692_v18 = vmul.f32 1e+30, %v1218_v7 }
  0x22   :  { %191 = vmatprep.subr.bf16.mxu0 %v1464_v9 }
  0x25   :  { %192 = vmatpush1.bf16.msra.mxu0 %v1466_v10  ;;  %v1212_v10 = vadd.f32 -1.0, %v60_v3 }
  0x26   :  { %193 = vmatprep.subr.bf16.mxu0 %v1467_v11  ;;  %v61_v11 = vcvt.s32.f32 %v53_v4 }
  0x27   :  { %v1695_v23 = vmul.f32 1e+30, %v1212_v10 }
  0x28   :  { %v1213_v24 = vadd.f32 -1.0, %v61_v11 }
  0x29   :  { %194 = vmatpush1.bf16.msra.mxu0 %v1469_v12  ;;  %v54_v12 = vunpack.c.3.s8 %v49_v53 }
  0x2a   :  { %195 = vmatprep.subr.bf16.mxu0 %v1470_v13 }
  0x2d   :  { %196 = vmatpush1.bf16.msra.mxu0 %v1472_v14 }
  0x2e   :  { %197 = vmatprep.subr.bf16.mxu0 %v1473_v15 }
  0x31   :  { %198 = vmatpush1.bf16.msra.mxu0 %v1475_v16 }
  0x34   :  { %216 = vmatmul.mubr.bf16.vlgmr.msra.gmra.mrb[0].mxu0 %v99_v19 }
  0x35   :  { %225 = vmatprep.mubr.bf16.mxu0 %v1591_v0 }
  0x3c   :  { %226 = vmatmul.mubr.bf16.gmra.mrb[4].mxu0 %v100_v22  ;;  %v55_v22 = vunpack.c.0.s8 %v1681_v54 }
  0x3d   :  { %235 = vmatprep.mubr.bf16.mxu0 %v1591_v0 }
  0x44   :  { %236 = vmatmul.mubr.bf16.gmra.mrb[8].mxu0 %v101_v25  ;;  %v62_v25 = vcvt.s32.f32 %v54_v12 }
  0x45   :  { %245 = vmatprep.mubr.bf16.mxu0 %v1591_v0 }
  0x4c   :  { %246 = vmatmul.mubr.bf16.gmra.mrb[12].mxu0 %v102_v28 }
 0x107   :  { %v217_v29 = vpop.f32.mrb[0].mxu0 }
 0x108   :  { %v219_v30 = vpop.f32.mrb[1].mxu0 }
 0x109   :  { %290 = vperm.xlu0 %1450, %v219_v30   ;;  %v221_v31 = vpop.f32.mrb[2].mxu0 }
 0x10a   :  { %v445_v32 = vpack.c.bf16 %v221_v31, %v217_v29  ;;  %v223_v33 = vpop.f32.mrb[3].mxu0 }
 0x10c   :  { %1311 = vmatprep.subr.bf16.mxu1 %v445_v32 }
 0x10d   :  { %1312 = vmatpush3.bf16.msra.mxu1 %v445_v32  ;;  %295 = vperm.xlu0 %1450, %v223_v33  }
 0x10f   :  { %v227_v34 = vpop.f32.mrb[4].mxu0 }
 0x110   :  { %v229_v35 = vpop.f32.mrb[5].mxu0 }
 0x111   :  { %300 = vperm.xlu1 %1451, %v229_v35   ;;  %v231_v36 = vpop.f32.mrb[6].mxu0 }
 0x112   :  { %v446_v37 = vpack.c.bf16 %v231_v36, %v227_v34  ;;  %v233_v38 = vpop.f32.mrb[7].mxu0  ;;  %v56_v34 = vunpack.c.1.s8 %v1681_v54  ;;  %v1214_v36 = vadd.f32 -1.0, %v62_v25 }
 0x114   :  { %1313 = vmatprep.subr.bf16.mxu1 %v446_v37 }
 0x115   :  { %1314 = vmatpush3.bf16.msra.mxu1 %v446_v37  ;;  %305 = vperm.xlu1 %1451, %v233_v38  }
 0x117   :  { %v237_v39 = vpop.f32.mrb[8].mxu0 }
 0x118   :  { %v239_v40 = vpop.f32.mrb[9].mxu0 }
 0x119   :  { %310 = vperm.xlu0 %1450, %v239_v40   ;;  %v241_v41 = vpop.f32.mrb[10].mxu0 }
 0x11a   :  { %v447_v42 = vpack.c.bf16 %v241_v41, %v237_v39  ;;  %v243_v43 = vpop.f32.mrb[11].mxu0 }
 0x11b   :  { %315 = vperm.xlu1 %1451, %v243_v43  }
 0x11c   :  { %1315 = vmatprep.subr.bf16.mxu1 %v447_v42 }
 0x11d   :  { %1316 = vmatpush3.bf16.msra.mxu1 %v447_v42 }
 0x11f   :  { %v247_v44 = vpop.f32.mrb[12].mxu0 }
 0x120   :  { %v249_v45 = vpop.f32.mrb[13].mxu0 }
 0x121   :  { %320 = vperm.xlu0 %1450, %v249_v45   ;;  %v251_v46 = vpop.f32.mrb[14].mxu0 }
 0x122   :  { %v448_v47 = vpack.c.bf16 %v251_v46, %v247_v44  ;;  %v253_v48 = vpop.f32.mrb[15].mxu0  ;;  %v1708_v44 = vmul.f32 1e+30, %v1214_v36 }
 0x123   :  { %325 = vperm.xlu1 %1451, %v253_v48  }
 0x124   :  { %1317 = vmatprep.subr.bf16.mxu1 %v448_v47 }
 0x125   :  { %1318 = vmatpush3.bf16.msra.mxu1 %v448_v47  ;;  %v57_v47 = vunpack.c.2.s8 %v1681_v54 }
 0x127   :  { %v65_v56 = vcvt.s32.f32 %v57_v47 }
 0x13f   :  { %256 = vxpose.xlu0.b32.start [1/8] (short) (narrow) %v219_v30, 8 }
 0x143   :  { %257 = vxpose.xlu0.b32.cont [2/8] (short) (narrow) %v223_v33, 8  ;;  %v63_v33 = vcvt.s32.f32 %v55_v22 }
 0x147   :  { %258 = vxpose.xlu0.b32.cont [3/8] (short) (narrow) %v229_v35, 8  ;;  %v1702_v35 = vmul.f32 1e+30, %v1213_v24 }
 0x14b   :  { %259 = vxpose.xlu0.b32.cont [4/8] (short) (narrow) %v233_v38, 8 }
 0x14f   :  { %260 = vxpose.xlu0.b32.cont [5/8] (short) (narrow) %v239_v40, 8 }
 0x153   :  { %261 = vxpose.xlu0.b32.cont [6/8] (short) (narrow) %v243_v43, 8  ;;  %v64_v43 = vcvt.s32.f32 %v56_v34 }
 0x157   :  { %262 = vxpose.xlu0.b32.cont [7/8] (short) (narrow) %v249_v45, 8  ;;  %v1215_v45 = vadd.f32 -1.0, %v63_v33 }
 0x159   :  { %v1713_v53 = vmul.f32 1e+30, %v1215_v45 }
 0x15b   :  { %263 = vxpose.xlu0.b32.end [8/8] (short) (narrow) %v253_v48, 8 }
 0x188   :  { %v291_v49 = vpop.permute.xlu0 %290 }
 0x18c   :  { %v296_v50 = vpop.permute.xlu0 %295 }
 0x190   :  { %v301_v51 = vpop.permute.xlu1 %300 }
 0x194   :  { %v306_v59 = vpop.permute.xlu1 %305 }
 0x198   :  { %v311_v55 = vpop.permute.xlu0 %310 }
 0x19a   :  { %v316_v2 = vpop.permute.xlu1 %315 }
 0x1a0   :  { %v321_v61 = vpop.permute.xlu0 %320 }
 0x1a2   :  { %v326_v9 = vpop.permute.xlu1 %325 }
 0x1bf   :  { %v272_v5 = vpop.trf.xlu0 }
 0x1c0   :  { %v331_v8 = vrot.slane %v272_v5, %v330_v1 }
 0x1c2   :  { %v332_v13 = vadd.f32 %v331_v8, %v291_v49  ;;  %v339_v14 = vadd.f32 %v331_v8, %v326_v9  ;;  %v333_v15 = vadd.f32 %v331_v8, %v296_v50  ;;  %v334_v16 = vadd.f32 %v331_v8, %v301_v51 }
 0x1c3   :  { %v335_v26 = vadd.f32 %v331_v8, %v306_v59  ;;  %v336_v38 = vadd.f32 %v331_v8, %v311_v55  ;;  %v337_v46 = vadd.f32 %v331_v8, %v316_v2  ;;  %v1216_v55 = vadd.f32 -1.0, %v64_v43 }
 0x1c4   :  { %v340_v19 = vmul.f32 0.2, %v332_v13  ;;  %v347_v20 = vmul.f32 0.2, %v339_v14  ;;  %v341_v21 = vmul.f32 0.2, %v333_v15  ;;  %v338_v57 = vadd.f32 %v331_v8, %v321_v61 }
 0x1c5   :  { %v342_v30 = vmul.f32 0.2, %v334_v16  ;;  %v343_v37 = vmul.f32 0.2, %v335_v26  ;;  %v344_v51 = vmul.f32 0.2, %v336_v38 }
 0x1c6   :  { %v348_v27 = vmax.f32 %v332_v13, %v340_v19  ;;  %v355_v28 = vmax.f32 %v339_v14, %v347_v20  ;;  %v349_v29 = vmax.f32 %v333_v15, %v341_v21  ;;  %v345_v63 = vmul.f32 0.2, %v337_v46 }
 0x1c7   :  { %v350_v42 = vmax.f32 %v334_v16, %v342_v30  ;;  %v351_v50 = vmax.f32 %v335_v26, %v343_v37  ;;  %v352_v62 = vmax.f32 %v336_v38, %v344_v51  ;;  %v1717_v54 = vmul.f32 1e+30, %v1216_v55 }
 0x1c8   :  { %v356_v31 = vadd.f32 %v348_v27, %v1690_v17  ;;  %v1699_v32 = vadd.f32 %v355_v28, %v1692_v18  ;;  %v357_v41 = vadd.f32 %v349_v29, %v1695_v23  ;;  %v1217_v2 = vadd.f32 -1.0, %v65_v56 }
 0x1c9   :  { %v358_v49 = vadd.f32 %v350_v42, %v1702_v35  ;;  %v359_v60 = vadd.f32 %v351_v50, %v1708_v44  ;;  %v360_v4 = vadd.f32 %v352_v62, %v1713_v53  ;;  %v353_v5 = vmax.f32 %v337_v46, %v345_v63  ;;  %v1478_v63 = vld [vmem:[#allocation2 + $0x84] ss:$8 sps:$4 sm:$0xff]  }
 0x1ca   :  { %v365_v39 = vsel %vm364_vm0, %v356_v31, -inf  ;;  %v386_v40 = vsel %vm364_vm0, %v1699_v32, -inf  ;;  %v368_v48 = vsel %vm364_vm0, %v357_v41, -inf  ;;  %v346_v6 = vmul.f32 0.2, %v338_v57  ;;  %646 = vmatprep.subr.bf16.mxu1 %v1478_v63 }
 0x1cb   :  { %366 = vmax.xlane.f32.xlu1 %v365_v39  ;;  %387 = vmax.xlane.f32.xlu0 %v386_v40  ;;  %v371_v59 = vsel %vm364_vm0, %v358_v49, -inf  ;;  %v374_v3 = vsel %vm364_vm0, %v359_v60, -inf  ;;  %v377_v7 = vsel %vm364_vm0, %v360_v4, -inf  ;;  %v361_v61 = vadd.f32 %v353_v5, %v1717_v54 }
 0x1cc   :  { %v1723_v8 = vmul.f32 1e+30, %v1217_v2  ;;  %v354_v9 = vmax.f32 %v338_v57, %v346_v6 }
 0x1cd   :  { %v380_v10 = vsel %vm364_vm0, %v361_v61, -inf }
 0x1ce   :  { %v362_v11 = vadd.f32 %v354_v9, %v1723_v8 }
 0x1cf   :  { %369 = vmax.xlane.f32.xlu1 %v368_v48 }
 0x1d0   :  { %v383_v12 = vsel %vm364_vm0, %v362_v11, -inf }
 0x1d3   :  { %372 = vmax.xlane.f32.xlu1 %v371_v59 }
 0x1d7   :  { %375 = vmax.xlane.f32.xlu1 %v374_v3 }
 0x1db   :  { %378 = vmax.xlane.f32.xlu1 %v377_v7 }
 0x1df   :  { %381 = vmax.xlane.f32.xlu1 %v380_v10 }
 0x1e3   :  { %384 = vmax.xlane.f32.xlu1 %v383_v12 }
 0x258   :  { %v367_v13 = vpop.xlane.xlu1 %366  ;;  %v388_v38 = vpop.xlane.xlu0 %387 }
 0x259   :  { %v389_v14 = vsub.f32 %v356_v31, %v367_v13  ;;  %v396_v42 = vsub.f32 %v1699_v32, %v388_v38  ;;  %v1490_v38 = vld [vmem:[#allocation2 + $0xc4] ss:$8 sps:$4 sm:$0xff]  }
 0x25b   :  { %v397_v15 = vmul.f32 1.442695, %v389_v14 }
 0x25c   :  { %v370_v16 = vpop.xlane.xlu1 %369 }
 0x25d   :  { %v390_v19 = vsub.f32 %v357_v41, %v370_v16  ;;  %1500 = vpow2.f32 %v397_v15 }
 0x25f   :  { %v399_v20 = vmul.f32 1.442695, %v390_v19 }
 0x260   :  { %v373_v21 = vpop.xlane.xlu1 %372 }
 0x261   :  { %1502 = vpow2.f32 %v399_v20  ;;  %v391_v22 = vsub.f32 %v358_v49, %v373_v21  ;;  %v411_v49 = vmul.f32 1.442695, %v396_v42  ;;  %v1476_v20 = vld [vmem:[#allocation2 + $0x80] ss:$8 sps:$4 sm:$0xff]  }
 0x262   :  { %v1488_v42 = vld [vmem:[#allocation2 + $0xc0] ss:$8 sps:$4 sm:$0xff]  }
 0x263   :  { %v401_v24 = vmul.f32 1.442695, %v391_v22  ;;  %v1481_v22 = vld [vmem:[#allocation2 + $0x94] ss:$8 sps:$4 sm:$0xff]  }
 0x264   :  { %v376_v25 = vpop.xlane.xlu1 %375 }
 0x265   :  { %1504 = vpow2.f32 %v401_v24  ;;  %v392_v26 = vsub.f32 %v359_v60, %v376_v25 }
 0x267   :  { %v403_v27 = vmul.f32 1.442695, %v392_v26  ;;  %v1501_v28 = vpop.eup %1500  ;;  %v1479_v26 = vld [vmem:[#allocation2 + $0x90] ss:$8 sps:$4 sm:$0xff]  }
 0x268   :  { %v379_v29 = vpop.xlane.xlu1 %378  ;;  %v413_v33 = vsel %vm364_vm0, %v1501_v28, 0.0 }
 0x269   :  { %1506 = vpow2.f32 %v403_v27  ;;  %v393_v30 = vsub.f32 %v360_v4, %v379_v29  ;;  %414 = vadd.xlane.f32.xlu1 %v413_v33  ;;  %v1484_v27 = vld [vmem:[#allocation2 + $0xa4] ss:$8 sps:$4 sm:$0xff]   ;;  %v1482_v33 = vld [vmem:[#allocation2 + $0xa0] ss:$8 sps:$4 sm:$0xff]  }
 0x26b   :  { %v1503_v31 = vpop.eup %1502  ;;  %v405_v34 = vmul.f32 1.442695, %v393_v30 }
 0x26c   :  { %v382_v36 = vpop.xlane.xlu1 %381  ;;  %v416_v37 = vsel %vm364_vm0, %v1503_v31, 0.0 }
 0x26d   :  { %1508 = vpow2.f32 %v405_v34  ;;  %v394_v39 = vsub.f32 %v361_v61, %v382_v36  ;;  %417 = vadd.xlane.f32.xlu1 %v416_v37  ;;  %v1487_v34 = vld [vmem:[#allocation2 + $0xb4] ss:$8 sps:$4 sm:$0xff]   ;;  %v1485_v37 = vld [vmem:[#allocation2 + $0xb0] ss:$8 sps:$4 sm:$0xff]  }
 0x26f   :  { %v1505_v40 = vpop.eup %1504  ;;  %v407_v41 = vmul.f32 1.442695, %v394_v39 }
 0x270   :  { %v385_v43 = vpop.xlane.xlu1 %384  ;;  %v419_v45 = vsel %vm364_vm0, %v1505_v40, 0.0 }
 0x271   :  { %1510 = vpow2.f32 %v407_v41  ;;  %v395_v46 = vsub.f32 %v362_v11, %v385_v43  ;;  %420 = vadd.xlane.f32.xlu1 %v419_v45  ;;  %v1493_v45 = vld [vmem:[#allocation2 + $0xd4] ss:$8 sps:$4 sm:$0xff]  }
 0x273   :  { %v1507_v47 = vpop.eup %1506  ;;  %v409_v48 = vmul.f32 1.442695, %v395_v46  ;;  %v1491_v46 = vld [vmem:[#allocation2 + $0xd0] ss:$8 sps:$4 sm:$0xff]  }
 0x274   :  { %v422_v50 = vsel %vm364_vm0, %v1507_v47, 0.0 }
 0x275   :  { %1512 = vpow2.f32 %v409_v48  ;;  %423 = vadd.xlane.f32.xlu1 %v422_v50  ;;  %v1494_v48 = vld [vmem:[#allocation2 + $0xe0] ss:$8 sps:$4 sm:$0xff]   ;;  %v1497_v50 = vld [vmem:[#allocation2 + $0xf0] ss:$8 sps:$4 sm:$0xff]  }
 0x276   :  { %1514 = vpow2.f32 %v411_v49  ;;  %v1499_v49 = vld [vmem:[#allocation2 + $0xf4] ss:$8 sps:$4 sm:$0xff]  }
 0x277   :  { %v1509_v51 = vpop.eup %1508 }
 0x278   :  { %v425_v55 = vsel %vm364_vm0, %v1509_v51, 0.0 }
 0x279   :  { %426 = vadd.xlane.f32.xlu1 %v425_v55  ;;  %v1235_v55 = vld [vmem:[%s1859_s2] ss:$0 sm:$0xff] }
 0x27b   :  { %v1511_v56 = vpop.eup %1510 }
 0x27c   :  { %v428_v32 = vsel %vm364_vm0, %v1511_v56, 0.0 }
 0x27d   :  { %429 = vadd.xlane.f32.xlu1 %v428_v32 }
 0x27f   :  { %v1513_v57 = vpop.eup %1512 }
 0x280   :  { %v431_v59 = vsel %vm364_vm0, %v1513_v57, 0.0  ;;  %v1515_v60 = vpop.eup %1514 }
 0x281   :  { %432 = vadd.xlane.f32.xlu1 %v431_v59  ;;  %v434_v62 = vsel %vm364_vm0, %v1515_v60, 0.0 }
 0x285   :  { %435 = vadd.xlane.f32.xlu1 %v434_v62 }
 0x2f6   :  { %v415_v2 = vpop.xlane.xlu1 %414 }
 0x2f7   :  { %1516 = vrcp.f32 %v415_v2 }
 0x2fa   :  { %v418_v3 = vpop.xlane.xlu1 %417 }
 0x2fb   :  { %1518 = vrcp.f32 %v418_v3 }
 0x2fe   :  { %v421_v4 = vpop.xlane.xlu1 %420 }
 0x2ff   :  { %1520 = vrcp.f32 %v421_v4 }
 0x301   :  { %v1517_v6 = vpop.eup %1516 }
 0x302   :  { %v424_v5 = vpop.xlane.xlu1 %423  ;;  %v450_v9 = vmul.f32 %v1517_v6, %v1501_v28 }
 0x303   :  { %1522 = vrcp.f32 %v424_v5 }
 0x305   :  { %v1519_v7 = vpop.eup %1518 }
 0x306   :  { %v427_v61 = vpop.xlane.xlu1 %426  ;;  %v451_v10 = vmul.f32 %v1519_v7, %v1503_v31 }
 0x307   :  { %1524 = vrcp.f32 %v427_v61 }
 0x308   :  { %v458_v11 = vpack.c.bf16 %v451_v10, %v450_v9 }
 0x309   :  { %v1521_v13 = vpop.eup %1520 }
 0x30a   :  { %1319 = vmatprep.mubr.msk.bf16.mxu1 %vm364_vm0, %v458_v11  ;;  %v430_v12 = vpop.xlane.xlu1 %429  ;;  %v452_v16 = vmul.f32 %v1521_v13, %v1505_v40 }
 0x30b   :  { %1526 = vrcp.f32 %v430_v12 }
 0x30d   :  { %v1523_v14 = vpop.eup %1522 }
 0x30e   :  { %v433_v15 = vpop.xlane.xlu1 %432  ;;  %v453_v19 = vmul.f32 %v1523_v14, %v1507_v47  ;;  %v1496_v47 = vld [vmem:[#allocation2 + $0xe4] ss:$8 sps:$4 sm:$0xff]  }
 0x30f   :  { %1528 = vrcp.f32 %v433_v15 }
 0x310   :  { %v459_v21 = vpack.c.bf16 %v453_v19, %v452_v16 }
 0x311   :  { %v1525_v25 = vpop.eup %1524 }
 0x312   :  { %1320 = vmatmul.mubr.msk.bf16.vlgmr.msra.gmra.mrb[0].mxu1 %vm364_vm0, %v459_v21  ;;  %v436_v24 = vpop.xlane.xlu1 %435  ;;  %v454_v29 = vmul.f32 %v1525_v25, %v1509_v51 }
 0x313   :  { %1530 = vrcp.f32 %v436_v24  ;;  %647 = vmatpush1.bf16.msra.mxu1 %v1476_v20 }
 0x314   :  { %648 = vmatprep.subr.bf16.mxu1 %v1481_v22 }
 0x315   :  { %v1527_v28 = vpop.eup %1526 }
 0x316   :  { %v455_v30 = vmul.f32 %v1527_v28, %v1511_v56 }
 0x317   :  { %649 = vmatpush1.bf16.msra.mxu1 %v1479_v26 }
 0x318   :  { %v460_v31 = vpack.c.bf16 %v455_v30, %v454_v29  ;;  %650 = vmatprep.subr.bf16.mxu1 %v1484_v27 }
 0x319   :  { %v1529_v36 = vpop.eup %1528 }
 0x31a   :  { %1323 = vmatprep.mubr.msk.bf16.mxu1 %vm364_vm0, %v460_v31  ;;  %v456_v40 = vmul.f32 %v1529_v36, %v1513_v57 }
 0x31b   :  { %651 = vmatpush1.bf16.msra.mxu1 %v1482_v33 }
 0x31c   :  { %652 = vmatprep.subr.bf16.mxu1 %v1487_v34 }
 0x31d   :  { %v1531_v39 = vpop.eup %1530 }
 0x31e   :  { %v457_v41 = vmul.f32 %v1531_v39, %v1515_v60 }
 0x31f   :  { %653 = vmatpush1.bf16.msra.mxu1 %v1485_v37 }
 0x320   :  { %v461_v43 = vpack.c.bf16 %v457_v41, %v456_v40  ;;  %654 = vmatprep.subr.bf16.mxu1 %v1490_v38 }
 0x322   :  { %1324 = vmatmul.mubr.msk.bf16.gmra.mrb[4].mxu1 %vm364_vm0, %v461_v43 }
 0x323   :  { %655 = vmatpush1.bf16.msra.mxu1 %v1488_v42  ;;  %678 = vmatprep.mubr.bf16.mxu1 %v1591_v0 }
 0x324   :  { %656 = vmatprep.subr.bf16.mxu1 %v1493_v45 }
 0x327   :  { %657 = vmatpush1.bf16.msra.mxu1 %v1491_v46 }
 0x328   :  { %658 = vmatprep.subr.bf16.mxu1 %v1496_v47 }
 0x32b   :  { %659 = vmatpush1.bf16.msra.mxu1 %v1494_v48 }
 0x32c   :  { %660 = vmatprep.subr.bf16.mxu1 %v1499_v49 }
 0x32f   :  { %661 = vmatpush1.bf16.msra.mxu1 %v1497_v50 }
 0x3e5   :  { %v1321_v51 = vpop.f32.mrb[0].mxu1 }
 0x3e6   :  { %v514_v56 = vpop.f32.mrb[1].mxu1  ;;  %v523_v57 = vadd.f32 %v1321_v51, %v1235_v55 }
 0x3e7   :  { %v1322_v32 = vpop.f32.mrb[2].mxu1  ;;  %v515_v62 = vadd.f32 %v1235_v55, %v514_v56 }
 0x3e8   :  { %v526_v59 = vadd.f32 %v1322_v32, %v1235_v55  ;;  %v517_v60 = vpop.f32.mrb[3].mxu1 }
 0x3e9   :  { %v518_v63 = vadd.f32 %v1235_v55, %v517_v60 }
 0x3ea   :  { %v563_v2 = vpack.c.bf16 %v526_v59, %v523_v57 }
 0x3eb   :  { %v562_v3 = vpack.c.bf16 %v518_v63, %v515_v62 }
 0x3ed   :  { %679 = vmatmul.mubr.bf16.vlgmr.msra.gmra.mrb[8].mxu1 %v562_v3 }
 0x3ee   :  { %688 = vmatprep.mubr.bf16.mxu1 %v1591_v0 }
 0x3f5   :  { %v1325_v4 = vpop.f32.mrb[4].mxu1  ;;  %689 = vmatmul.mubr.bf16.gmra.mrb[12].mxu1 %v563_v2 }
 0x3f6   :  { %v530_v5 = vpop.f32.mrb[5].mxu1  ;;  %698 = vmatprep.mubr.bf16.mxu1 %v1591_v0  ;;  %v539_v7 = vadd.f32 %v1325_v4, %v1235_v55 }
 0x3f7   :  { %v1326_v6 = vpop.f32.mrb[6].mxu1  ;;  %v531_v10 = vadd.f32 %v1235_v55, %v530_v5 }
 0x3f8   :  { %v542_v61 = vadd.f32 %v1326_v6, %v1235_v55  ;;  %v533_v9 = vpop.f32.mrb[7].mxu1 }
 0x3f9   :  { %v534_v11 = vadd.f32 %v1235_v55, %v533_v9 }
 0x3fa   :  { %v565_v12 = vpack.c.bf16 %v542_v61, %v539_v7 }
 0x3fb   :  { %v564_v13 = vpack.c.bf16 %v534_v11, %v531_v10 }
 0x3fd   :  { %699 = vmatmul.mubr.bf16.gmra.mrb[16].mxu1 %v564_v13 }
 0x3fe   :  { %708 = vmatprep.mubr.bf16.mxu1 %v1591_v0 }
 0x405   :  { %709 = vmatmul.mubr.bf16.gmra.mrb[20].mxu1 %v565_v12 }
 0x4c0   :  { %v680_v14 = vpop.f32.mrb[8].mxu1 }
 0x4c1   :  { %v682_v15 = vpop.f32.mrb[9].mxu1 }
 0x4c2   :  { %753 = vperm.xlu1 %1451, %v682_v15   ;;  %v684_v16 = vpop.f32.mrb[10].mxu1 }
 0x4c3   :  { %v907_v19 = vpack.c.bf16 %v684_v16, %v680_v14  ;;  %v686_v20 = vpop.f32.mrb[11].mxu1 }
 0x4c4   :  { %758 = vperm.xlu0 %1450, %v686_v20  }
 0x4c5   :  { %1327 = vmatprep.subr.bf16.mxu0 %v907_v19 }
 0x4c6   :  { %1328 = vmatpush3.bf16.msra.mxu0 %v907_v19 }
 0x4c8   :  { %v690_v21 = vpop.f32.mrb[12].mxu1 }
 0x4c9   :  { %v692_v22 = vpop.f32.mrb[13].mxu1 }
 0x4ca   :  { %763 = vperm.xlu1 %1451, %v692_v22   ;;  %v694_v24 = vpop.f32.mrb[14].mxu1 }
 0x4cb   :  { %v908_v25 = vpack.c.bf16 %v694_v24, %v690_v21  ;;  %v696_v26 = vpop.f32.mrb[15].mxu1 }
 0x4cd   :  { %1329 = vmatprep.subr.bf16.mxu0 %v908_v25 }
 0x4ce   :  { %1330 = vmatpush3.bf16.msra.mxu0 %v908_v25  ;;  %768 = vperm.xlu1 %1451, %v696_v26  }
 0x4d0   :  { %v700_v0 = vpop.f32.mrb[16].mxu1 }
 0x4d1   :  { %v702_v27 = vpop.f32.mrb[17].mxu1 }
 0x4d2   :  { %773 = vperm.xlu1 %1451, %v702_v27   ;;  %v704_v28 = vpop.f32.mrb[18].mxu1 }
 0x4d3   :  { %v909_v29 = vpack.c.bf16 %v704_v28, %v700_v0  ;;  %v706_v30 = vpop.f32.mrb[19].mxu1 }
 0x4d5   :  { %1331 = vmatprep.subr.bf16.mxu0 %v909_v29 }
 0x4d6   :  { %1332 = vmatpush3.bf16.msra.mxu0 %v909_v29  ;;  %778 = vperm.xlu1 %1451, %v706_v30  }
 0x4d8   :  { %v710_v33 = vpop.f32.mrb[20].mxu1 }
 0x4d9   :  { %v712_v31 = vpop.f32.mrb[21].mxu1 }
 0x4da   :  { %783 = vperm.xlu0 %1450, %v712_v31   ;;  %v714_v34 = vpop.f32.mrb[22].mxu1 }
 0x4db   :  { %v910_v36 = vpack.c.bf16 %v714_v34, %v710_v33  ;;  %v716_v37 = vpop.f32.mrb[23].mxu1 }
 0x4dc   :  { %788 = vperm.xlu1 %1451, %v716_v37  }
 0x4dd   :  { %1333 = vmatprep.subr.bf16.mxu0 %v910_v36 }
 0x4de   :  { %1334 = vmatpush3.bf16.msra.mxu0 %v910_v36 }
 0x4f8   :  { %719 = vxpose.xlu0.b32.start [1/8] (short) (narrow) %v682_v15, 8 }
 0x4fc   :  { %720 = vxpose.xlu0.b32.cont [2/8] (short) (narrow) %v686_v20, 8 }
 0x500   :  { %721 = vxpose.xlu0.b32.cont [3/8] (short) (narrow) %v692_v22, 8 }
 0x504   :  { %722 = vxpose.xlu0.b32.cont [4/8] (short) (narrow) %v696_v26, 8 }
 0x508   :  { %723 = vxpose.xlu0.b32.cont [5/8] (short) (narrow) %v702_v27, 8 }
 0x50c   :  { %724 = vxpose.xlu0.b32.cont [6/8] (short) (narrow) %v706_v30, 8 }
 0x510   :  { %725 = vxpose.xlu0.b32.cont [7/8] (short) (narrow) %v712_v31, 8 }
 0x514   :  { %726 = vxpose.xlu0.b32.end [8/8] (short) (narrow) %v716_v37, 8 }
 0x541   :  { %v754_v38 = vpop.permute.xlu1 %753 }
 0x543   :  { %v759_v41 = vpop.permute.xlu0 %758 }
 0x549   :  { %v764_v39 = vpop.permute.xlu1 %763 }
 0x54d   :  { %v769_v40 = vpop.permute.xlu1 %768 }
 0x551   :  { %v774_v42 = vpop.permute.xlu1 %773 }
 0x555   :  { %v779_v45 = vpop.permute.xlu1 %778 }
 0x559   :  { %v784_v43 = vpop.permute.xlu0 %783 }
 0x55b   :  { %v789_v48 = vpop.permute.xlu1 %788 }
 0x578   :  { %v735_v46 = vpop.trf.xlu0 }
 0x579   :  { %v794_v47 = vrot.slane %v735_v46, %v330_v1 }
 0x57b   :  { %v795_v49 = vadd.f32 %v794_v47, %v754_v38  ;;  %v802_v50 = vadd.f32 %v794_v47, %v789_v48  ;;  %v796_v51 = vadd.f32 %v794_v47, %v759_v41  ;;  %v797_v55 = vadd.f32 %v794_v47, %v764_v39 }
 0x57c   :  { %v798_v59 = vadd.f32 %v794_v47, %v769_v40  ;;  %v799_v1 = vadd.f32 %v794_v47, %v774_v42  ;;  %v800_v9 = vadd.f32 %v794_v47, %v779_v45  ;;  %v801_v12 = vadd.f32 %v794_v47, %v784_v43 }
 0x57d   :  { %v803_v56 = vmul.f32 0.2, %v795_v49  ;;  %v810_v32 = vmul.f32 0.2, %v802_v50  ;;  %v804_v57 = vmul.f32 0.2, %v796_v51 }
 0x57e   :  { %v805_v2 = vmul.f32 0.2, %v797_v55  ;;  %v806_v58 = vmul.f32 0.2, %v798_v59  ;;  %v808_v16 = vmul.f32 0.2, %v800_v9 }
 0x57f   :  { %v811_v60 = vmax.f32 %v795_v49, %v803_v56  ;;  %v818_v62 = vmax.f32 %v802_v50, %v810_v32  ;;  %v812_v63 = vmax.f32 %v796_v51, %v804_v57  ;;  %v809_v21 = vmul.f32 0.2, %v801_v12 }
 0x580   :  { %v813_v61 = vmax.f32 %v797_v55, %v805_v2  ;;  %v814_v11 = vmax.f32 %v798_v59, %v806_v58  ;;  %v816_v20 = vmax.f32 %v800_v9, %v808_v16 }
 0x581   :  { %v819_v3 = vadd.f32 %v811_v60, %v1690_v17  ;;  %v1752_v4 = vadd.f32 %v818_v62, %v1692_v18  ;;  %v820_v7 = vadd.f32 %v812_v63, %v1695_v23  ;;  %v807_v18 = vmul.f32 0.2, %v799_v1 }
 0x582   :  { %v821_v17 = vadd.f32 %v813_v61, %v1702_v35  ;;  %v822_v14 = vadd.f32 %v814_v11, %v1708_v44  ;;  %v824_v22 = vadd.f32 %v816_v20, %v1717_v54  ;;  %v817_v24 = vmax.f32 %v801_v12, %v809_v21  ;;  %v1009_v44 = vld [vmem:[%s1861_s4 + $0x8] sm:$0xff] }
 0x583   :  { %v827_v5 = vsel %vm364_vm0, %v819_v3, -inf  ;;  %v848_v6 = vsel %vm364_vm0, %v1752_v4, -inf  ;;  %v830_v10 = vsel %vm364_vm0, %v820_v7, -inf  ;;  %v815_v15 = vmax.f32 %v799_v1, %v807_v18 }
 0x584   :  { %828 = vmax.xlane.f32.xlu1 %v827_v5  ;;  %849 = vmax.xlane.f32.xlu0 %v848_v6  ;;  %v833_v13 = vsel %vm364_vm0, %v821_v17, -inf  ;;  %v836_v23 = vsel %vm364_vm0, %v822_v14, -inf  ;;  %v842_v25 = vsel %vm364_vm0, %v824_v22, -inf  ;;  %v825_v26 = vadd.f32 %v817_v24, %v1723_v8 }
 0x585   :  { %v823_v19 = vadd.f32 %v815_v15, %v1713_v53 }
 0x586   :  { %v845_v53 = vsel %vm364_vm0, %v825_v26, -inf }
 0x587   :  { %v839_v35 = vsel %vm364_vm0, %v823_v19, -inf }
 0x588   :  { %831 = vmax.xlane.f32.xlu1 %v830_v10 }
 0x58c   :  { %834 = vmax.xlane.f32.xlu1 %v833_v13 }
 0x590   :  { %837 = vmax.xlane.f32.xlu1 %v836_v23 }
 0x594   :  { %840 = vmax.xlane.f32.xlu1 %v839_v35 }
 0x598   :  { %843 = vmax.xlane.f32.xlu1 %v842_v25 }
 0x59a   :  { %1016 = vperm.xlu0 %1450, %v1009_v44  }
 0x59c   :  { %846 = vmax.xlane.f32.xlu1 %v845_v53 }
 0x611   :  { %v829_v0 = vpop.xlane.xlu1 %828  ;;  %v850_v47 = vpop.xlane.xlu0 %849 }
 0x612   :  { %v851_v27 = vsub.f32 %v819_v3, %v829_v0  ;;  %v858_v51 = vsub.f32 %v1752_v4, %v850_v47 }
 0x614   :  { %v859_v28 = vmul.f32 1.442695, %v851_v27  ;;  %v873_v60 = vmul.f32 1.442695, %v858_v51  ;;  %v1115_v51 = vld [vmem:[%s1862_s5 + $0x50] sm:$0xff] }
 0x615   :  { %v832_v29 = vpop.xlane.xlu1 %831 }
 0x616   :  { %v852_v54 = vsub.f32 %v820_v7, %v832_v29  ;;  %1532 = vpow2.f32 %v859_v28  ;;  %v1008_v7 = vld [vmem:[%s1861_s4] sm:$0xff] }
 0x618   :  { %v861_v30 = vmul.f32 1.442695, %v852_v54  ;;  %v1788_v54 = vand.u32 127, %v328_v52  ;;  %v1106_v52 = vld [vmem:[%s1862_s5 + $0x8] sm:$0xff] }
 0x619   :  { %v835_v33 = vpop.xlane.xlu1 %834 }
 0x61a   :  { %1534 = vpow2.f32 %v861_v30  ;;  %v853_v31 = vsub.f32 %v821_v17, %v835_v33 }
 0x61c   :  { %v863_v34 = vmul.f32 1.442695, %v853_v31 }
 0x61d   :  { %v838_v36 = vpop.xlane.xlu1 %837 }
 0x61e   :  { %1536 = vpow2.f32 %v863_v34  ;;  %v854_v37 = vsub.f32 %v822_v14, %v838_v36  ;;  %v1592_v34 = vmov 0.0  }
 0x620   :  { %v865_v8 = vmul.f32 1.442695, %v854_v37  ;;  %v1533_v38 = vpop.eup %1532  ;;  %v1105_v37 = vld [vmem:[%s1862_s5] sm:$0xff] }
 0x621   :  { %v841_v39 = vpop.xlane.xlu1 %840  ;;  %v875_v41 = vsel %vm364_vm0, %v1533_v38, 0.0 }
 0x622   :  { %1538 = vpow2.f32 %v865_v8  ;;  %v855_v40 = vsub.f32 %v823_v19, %v841_v39  ;;  %876 = vadd.xlane.f32.xlu1 %v875_v41  ;;  %v1107_v8 = vld [vmem:[%s1862_s5 + $0x10] sm:$0xff]  ;;  %v1108_v39 = vld [vmem:[%s1862_s5 + $0x18] sm:$0xff]  ;;  %v1109_v41 = vld [vmem:[%s1862_s5 + $0x20] sm:$0xff] }
 0x624   :  { %v1535_v42 = vpop.eup %1534  ;;  %v867_v43 = vmul.f32 1.442695, %v855_v40  ;;  %v1417_v40 = vpack.c.bf16 %v1108_v39, %v1107_v8 }
 0x625   :  { %v844_v45 = vpop.xlane.xlu1 %843  ;;  %v878_v46 = vsel %vm364_vm0, %v1535_v42, 0.0 }
 0x626   :  { %1540 = vpow2.f32 %v867_v43  ;;  %v856_v48 = vsub.f32 %v824_v22, %v844_v45  ;;  %879 = vadd.xlane.f32.xlu1 %v878_v46  ;;  %v1111_v45 = vld [vmem:[%s1862_s5 + $0x30] sm:$0xff]  ;;  %v1112_v46 = vld [vmem:[%s1862_s5 + $0x38] sm:$0xff] }
 0x627   :  { %v1425_v47 = vpack.c.bf16 %v1112_v46, %v1111_v45 }
 0x628   :  { %v1537_v49 = vpop.eup %1536  ;;  %v869_v50 = vmul.f32 1.442695, %v856_v48  ;;  %v1113_v48 = vld [vmem:[%s1862_s5 + $0x40] sm:$0xff] }
 0x629   :  { %v847_v55 = vpop.xlane.xlu1 %846  ;;  %v881_v56 = vsel %vm364_vm0, %v1537_v49, 0.0 }
 0x62a   :  { %1542 = vpow2.f32 %v869_v50  ;;  %v857_v32 = vsub.f32 %v825_v26, %v847_v55  ;;  %882 = vadd.xlane.f32.xlu1 %v881_v56  ;;  %v1116_v55 = vld [vmem:[%s1862_s5 + $0x58] sm:$0xff] }
 0x62b   :  { %v1433_v56 = vpack.c.bf16 %v1116_v55, %v1115_v51 }
 0x62c   :  { %v1539_v57 = vpop.eup %1538  ;;  %v871_v59 = vmul.f32 1.442695, %v857_v32  ;;  %v1117_v32 = vld [vmem:[%s1862_s5 + $0x60] sm:$0xff] }
 0x62d   :  { %v884_v62 = vsel %vm364_vm0, %v1539_v57, 0.0 }
 0x62e   :  { %1544 = vpow2.f32 %v871_v59  ;;  %885 = vadd.xlane.f32.xlu1 %v884_v62  ;;  %v1120_v62 = vld [vmem:[%s1862_s5 + $0x78] sm:$0xff] }
 0x62f   :  { %1546 = vpow2.f32 %v873_v60  ;;  %v1119_v60 = vld [vmem:[%s1862_s5 + $0x70] sm:$0xff] }
 0x630   :  { %v1541_v63 = vpop.eup %1540 }
 0x631   :  { %v887_v2 = vsel %vm364_vm0, %v1541_v63, 0.0 }
 0x632   :  { %888 = vadd.xlane.f32.xlu1 %v887_v2 }
 0x634   :  { %v1543_v3 = vpop.eup %1542 }
 0x635   :  { %v890_v4 = vsel %vm364_vm0, %v1543_v3, 0.0 }
 0x636   :  { %891 = vadd.xlane.f32.xlu1 %v890_v4 }
 0x638   :  { %v1545_v58 = vpop.eup %1544 }
 0x639   :  { %v893_v1 = vsel %vm364_vm0, %v1545_v58, 0.0  ;;  %v1547_v5 = vpop.eup %1546 }
 0x63a   :  { %894 = vadd.xlane.f32.xlu1 %v893_v1  ;;  %v896_v6 = vsel %vm364_vm0, %v1547_v5, 0.0 }
 0x63e   :  { %897 = vadd.xlane.f32.xlu1 %v896_v6 }
 0x64f   :  { %1013 = vperm.xlu1 %1451, %v1008_v7  }
 0x6af   :  { %v877_v61 = vpop.xlane.xlu1 %876 }
 0x6b0   :  { %1548 = vrcp.f32 %v877_v61 }
 0x6b3   :  { %v880_v9 = vpop.xlane.xlu1 %879 }
 0x6b4   :  { %1550 = vrcp.f32 %v880_v9 }
 0x6b7   :  { %v883_v10 = vpop.xlane.xlu1 %882 }
 0x6b8   :  { %1552 = vrcp.f32 %v883_v10 }
 0x6ba   :  { %v1549_v11 = vpop.eup %1548 }
 0x6bb   :  { %v886_v17 = vpop.xlane.xlu1 %885  ;;  %v913_v13 = vmul.f32 %v1549_v11, %v1533_v38  ;;  %v1413_v38 = vpack.c.bf16 %v1106_v52, %v1105_v37 }
 0x6bc   :  { %1554 = vrcp.f32 %v886_v17 }
 0x6bd   :  { %1414 = vmatprep.subr.bf16.mxu1 %v1413_v38 }
 0x6be   :  { %v1551_v18 = vpop.eup %1550  ;;  %1416 = vmatpush3.bf16.msra.mxu1 %v1413_v38 }
 0x6bf   :  { %v889_v12 = vpop.xlane.xlu1 %888  ;;  %v914_v14 = vmul.f32 %v1551_v18, %v1535_v42  ;;  %v1110_v42 = vld [vmem:[%s1862_s5 + $0x28] sm:$0xff]  ;;  %1418 = vmatprep.subr.bf16.mxu1 %v1417_v40 }
 0x6c0   :  { %1556 = vrcp.f32 %v889_v12  ;;  %v1421_v43 = vpack.c.bf16 %v1110_v42, %v1109_v41 }
 0x6c1   :  { %v921_v15 = vpack.c.bf16 %v914_v14, %v913_v13 }
 0x6c2   :  { %v1553_v23 = vpop.eup %1552  ;;  %1420 = vmatpush3.bf16.msra.mxu1 %v1417_v40 }
 0x6c3   :  { %1335 = vmatprep.mubr.msk.bf16.mxu0 %vm364_vm0, %v921_v15  ;;  %v892_v16 = vpop.xlane.xlu1 %891  ;;  %v915_v20 = vmul.f32 %v1553_v23, %v1537_v49  ;;  %1422 = vmatprep.subr.bf16.mxu1 %v1421_v43  ;;  %v1114_v49 = vld [vmem:[%s1862_s5 + $0x48] sm:$0xff] }
 0x6c4   :  { %1558 = vrcp.f32 %v892_v16  ;;  %v1429_v50 = vpack.c.bf16 %v1114_v49, %v1113_v48 }
 0x6c6   :  { %v1555_v19 = vpop.eup %1554  ;;  %1424 = vmatpush3.bf16.msra.mxu1 %v1421_v43 }
 0x6c7   :  { %v916_v21 = vmul.f32 %v1555_v19, %v1539_v57  ;;  %v895_v35 = vpop.xlane.xlu1 %894  ;;  %1426 = vmatprep.subr.bf16.mxu1 %v1425_v47  ;;  %v1118_v57 = vld [vmem:[%s1862_s5 + $0x68] sm:$0xff] }
 0x6c8   :  { %1560 = vrcp.f32 %v895_v35  ;;  %v1437_v59 = vpack.c.bf16 %v1118_v57, %v1117_v32 }
 0x6c9   :  { %v922_v22 = vpack.c.bf16 %v916_v21, %v915_v20  ;;  %v1017_v20 = vpop.permute.xlu0 %1016 }
 0x6ca   :  { %v1557_v25 = vpop.eup %1556  ;;  %1428 = vmatpush3.bf16.msra.mxu1 %v1425_v47  ;;  %vm1019_vm2 = vcmp.eq.s32.totalorder %v1788_v54, %v1017_v20 }
 0x6cb   :  { %1336 = vmatmul.mubr.msk.bf16.vlgmr.msra.gmra.mrb[16].mxu0 %vm364_vm0, %v922_v22  ;;  %v898_v24 = vpop.xlane.xlu1 %897  ;;  %v917_v26 = vmul.f32 %v1557_v25, %v1541_v63  ;;  %1430 = vmatprep.subr.bf16.mxu1 %v1429_v50  ;;  %v1441_v63 = vpack.c.bf16 %v1120_v62, %v1119_v60  ;;  %v1263_v21 = vsel %vm1019_vm2, 1.0, %v1592_v34 }
 0x6cc   :  { %1562 = vrcp.f32 %v898_v24  ;;  %v1266_v24 = vld [vmem:[%s1863_s6] ss:$0 sm:$0xff] }
 0x6ce   :  { %v1559_v44 = vpop.eup %1558  ;;  %1432 = vmatpush3.bf16.msra.mxu1 %v1429_v50 }
 0x6cf   :  { %v918_v53 = vmul.f32 %v1559_v44, %v1543_v3  ;;  %v1014_v28 = vpop.permute.xlu1 %1013  ;;  %1434 = vmatprep.subr.bf16.mxu1 %v1433_v56  ;;  %v1257_v3 = vld [vmem:[%s1859_s2 + $0x1] ss:$0 sm:$0xff] }
 0x6d0   :  { %vm1018_vm1 = vcmp.eq.s32.totalorder %v1788_v54, %v1014_v28 }
 0x6d1   :  { %v923_v0 = vpack.c.bf16 %v918_v53, %v917_v26  ;;  %v1262_v36 = vsel %vm1018_vm1, 1.0, %v1592_v34 }
 0x6d2   :  { %v1561_v27 = vpop.eup %1560  ;;  %1436 = vmatpush3.bf16.msra.mxu1 %v1433_v56 }
 0x6d3   :  { %1339 = vmatprep.mubr.msk.bf16.mxu0 %vm364_vm0, %v923_v0  ;;  %v919_v30 = vmul.f32 %v1561_v27, %v1545_v58  ;;  %1438 = vmatprep.subr.bf16.mxu1 %v1437_v59 }
 0x6d6   :  { %v1563_v29 = vpop.eup %1562  ;;  %1440 = vmatpush3.bf16.msra.mxu1 %v1437_v59 }
 0x6d7   :  { %v920_v33 = vmul.f32 %v1563_v29, %v1547_v5  ;;  %1442 = vmatprep.subr.bf16.mxu1 %v1441_v63 }
 0x6d9   :  { %v924_v31 = vpack.c.bf16 %v920_v33, %v919_v30 }
 0x6da   :  { %1444 = vmatpush3.bf16.msra.mxu1 %v1441_v63 }
 0x6db   :  { %1340 = vmatmul.mubr.msk.bf16.gmra.mrb[20].mxu0 %vm364_vm0, %v924_v31 }
 0x6dc   :  { %1359 = vmatprep.mubr.msk.f32.mxu0 %vm364_vm0, %v1262_v36 }
 0x79e   :  { %v1337_v2 = vpop.f32.mrb[16].mxu0 }
 0x79f   :  { %v977_v4 = vpop.f32.mrb[17].mxu0  ;;  %v986_v1 = vadd.f32 %v1337_v2, %v1257_v3 }
 0x7a0   :  { %v1338_v58 = vpop.f32.mrb[18].mxu0  ;;  %v978_v7 = vadd.f32 %v1257_v3, %v977_v4 }
 0x7a1   :  { %v989_v5 = vadd.f32 %v1338_v58, %v1257_v3  ;;  %v980_v6 = vpop.f32.mrb[19].mxu0 }
 0x7a2   :  { %v981_v61 = vadd.f32 %v1257_v3, %v980_v6 }
 0x7a3   :  { %v1401_v9 = vpack.c.bf16 %v989_v5, %v986_v1 }
 0x7a4   :  { %v1397_v10 = vpack.c.bf16 %v981_v61, %v978_v7 }
 0x7a6   :  { %1398 = vmatprep.subr.bf16.mxu0 %v1397_v10 }
 0x7a7   :  { %1400 = vmatpush3.bf16.msra.mxu0 %v1397_v10 }
 0x7a8   :  { %1402 = vmatprep.subr.bf16.mxu0 %v1401_v9 }
 0x7ab   :  { %1404 = vmatpush3.bf16.msra.mxu0 %v1401_v9 }
 0x7ae   :  { %v1341_v17 = vpop.f32.mrb[20].mxu0 }
 0x7af   :  { %v993_v11 = vpop.f32.mrb[21].mxu0  ;;  %v1002_v12 = vadd.f32 %v1341_v17, %v1257_v3 }
 0x7b0   :  { %v1342_v18 = vpop.f32.mrb[22].mxu0  ;;  %v994_v15 = vadd.f32 %v1257_v3, %v993_v11 }
 0x7b1   :  { %v1005_v13 = vadd.f32 %v1342_v18, %v1257_v3  ;;  %v996_v14 = vpop.f32.mrb[23].mxu0 }
 0x7b2   :  { %v997_v16 = vadd.f32 %v1257_v3, %v996_v14 }
 0x7b3   :  { %v1409_v23 = vpack.c.bf16 %v1005_v13, %v1002_v12 }
 0x7b4   :  { %v1405_v19 = vpack.c.bf16 %v997_v16, %v994_v15 }
 0x7b6   :  { %1406 = vmatprep.subr.bf16.mxu0 %v1405_v19 }
 0x7b7   :  { %1408 = vmatpush3.bf16.msra.mxu0 %v1405_v19 }
 0x7b8   :  { %1410 = vmatprep.subr.bf16.mxu0 %v1409_v23 }
 0x7bb   :  { %1412 = vmatpush3.bf16.msra.mxu0 %v1409_v23 }
 0x7be   :  { %1360 = vmatmul.mubr.msk.f32.vlgmr.msra.gmra.mrb[24].mxu0 %vm364_vm0, %v1263_v21 }
 0x891   :  { %v1361_v35 = vpop.f32.mrb[24].mxu0 }
 0x892   :  { %v1096_v22 = vpop.f32.mrb[25].mxu0 }
 0x893   :  { %1394 = vmatprep.mubr.f32.mxu1 %v1096_v22 }
 0x894   :  { %1395 = vmatmul.mubr.f32.vlgmr.msra.gmra.mrb[24].mxu1 %v1361_v35 }
 0x967   :  { %v1396_v25 = vpop.f32.mrb[24].mxu1 }
 0x968   :  { %v1200_v44 = vadd.f32 %v1396_v25, %v1266_v24  ;;  %v1194_v26 = vpop.f32.mrb[25].mxu1 }
 0x969   :  { %v1195_v53 = vadd.f32 %v1266_v24, %v1194_v26 }
 0x96a   :  { %1205 = vst.msk [vmem:[%s1864_s7 + $0x8] sm:$0xff] %vm1203_vm3, %v1200_v44 }
 0x96b   :  { %1204 = vst.msk [vmem:[%s1864_s7] sm:$0xff] %vm1203_vm3, %v1195_v53 }
 0x96c   :  { %1210 = vsyncpa [#allocation3], 1 }

</bundles_post_ra>
